<compile_context>
chip_gen: v5e
topology: v5e:2x2
jax: 0.10.0
libtpu: 0.0.40
codegen_flags: <defaults>
</compile_context>

<pallas_src>
import functools

import jax
import jax.numpy as jnp
from jax.experimental import pallas as pl
from jax.experimental.pallas import tpu as pltpu

_LANE = 128     # vreg lane width  -> last-dim padding granularity
_SUBLANE = 8    # vreg sublane width -> batch padding granularity


def _round_up(n, m):
    return ((n + m - 1) // m) * m


def _pick_bm(b_pad):
    """Largest batch tile that (a) divides b_pad, (b) leaves >=2 grid steps
    when possible (v7x has 2 TensorCores sharing the 'parallel' axis), and
    (c) is big enough (512-1024 rows) to amortize per-grid-step overhead."""
    if b_pad < 2 * _SUBLANE:
        return b_pad
    for bm in (1024, 512, 256, 128, 64, 32, 16, 8):
        if bm <= b_pad // 2 and b_pad % bm == 0:
            return bm
    return b_pad


def _pad_params_lane_dense(params):
    """Zero-pad every layer's output width to a multiple of 128.

    Padded weight columns / bias entries are exactly zero, so padded lanes
    stay zero through ReLU and contribute nothing to later layers (their
    corresponding weight rows in the next layer are also zero)."""
    padded = []
    prev_in = params[0][0].shape[0]          # input feature dim kept as-is
    for (w, b) in params:
        din, dout = w.shape
        dout_p = _round_up(dout, _LANE)
        w_p = jnp.zeros((prev_in, dout_p), w.dtype).at[:din, :dout].set(w)
        b_p = jnp.zeros((1, dout_p), b.dtype).at[0, :dout].set(b)
        padded.append((w_p, b_p))
        prev_in = dout_p
    return padded


def _mlp_fused_kernel(*refs, n_layers: int, mxu_dtype):
    """Fused forward: h_{l+1} = relu(h_l @ W_l + b_l), final layer sigmoid.

    refs = (x_ref, w0_ref, b0_ref, ..., o_ref); all full VMEM tiles.
    Intermediates live in vregs only; layers are unrolled at trace time."""
    x_ref = refs[0]
    o_ref = refs[-1]
    param_refs = refs[1:-1]

    h = x_ref[...]
    for layer in range(n_layers):
        w = param_refs[2 * layer][...]
        b = param_refs[2 * layer + 1][...]          # (1, Dout) lane-major bias
        y = jnp.dot(h.astype(mxu_dtype), w.astype(mxu_dtype),
                    preferred_element_type=jnp.float32)
        y = y + b                                   # f32 bias add
        if layer < n_layers - 1:
            # Linear -> ReLU -> Dropout (eval mode: identity)
            h = jnp.maximum(y, 0.0)
        else:
            # Output layer: Linear -> Sigmoid (EUP transcendental)
            h = jax.nn.sigmoid(y)
    o_ref[...] = h.astype(o_ref.dtype)


def mlp_forward(params, x, *, mxu_dtype=jnp.float32, interpret=False):
    """params: list of (W (Din, Dout), b (Dout,)); x: (B, Din) -> (B, Dlast).

    For realistic layer widths pass mxu_dtype=jnp.bfloat16 (v6e/v7x MXU rate,
    halves weight bytes); accumulation stays f32 either way."""
    B, Din = x.shape
    n_layers = len(params)
    no_labels = params[-1][0].shape[1]

    # ---- wrapper-side layout plumbing (all zero padding) -------------------
    padded = _pad_params_lane_dense(params)
    out_p = padded[-1][0].shape[1]              # lane-dense output width

    b_pad = _round_up(B, _SUBLANE)
    if b_pad != B:
        x = jnp.pad(x, ((0, b_pad - B), (0, 0)))
    bm = _pick_bm(b_pad)
    grid = (b_pad // bm,)

    flat_inputs = [x]
    for (w, b) in padded:
        flat_inputs.extend((w, b))

    out_shape = jax.ShapeDtypeStruct((b_pad, out_p), x.dtype)
    out_specs = pl.BlockSpec((bm, out_p), lambda i: (i, 0))

    # ---- advisory cost estimate for the XLA scheduler ----------------------
    flops = sum(2 * b_pad * w.shape[0] * w.shape[1] for (w, _) in padded)
    transcendentals = 2 * b_pad * out_p          # sigmoid ~ exp + reciprocal
    bytes_accessed = (
        sum(int(a.size) * a.dtype.itemsize for a in flat_inputs)
        + b_pad * out_p * x.dtype.itemsize)
    cost = pl.CostEstimate(flops=flops, transcendentals=transcendentals,
                           bytes_accessed=bytes_accessed)

    # ---- explicit VMEM budget (v5e default scoped VMEM is only 16 MiB) -----
    param_bytes = sum(int(w.size) * w.dtype.itemsize +
                      int(b.size) * b.dtype.itemsize for (w, b) in padded)
    widest = max([Din] + [w.shape[1] for (w, _) in padded])
    act_bytes = bm * widest * 4                                  # vreg-resident h (f32)
    io_bytes = 2 * (bm * Din + bm * out_p) * x.dtype.itemsize    # double-buffered x / out
    vmem_est = 2 * param_bytes + 4 * act_bytes + io_bytes
    vmem_limit = None
    if 2 * vmem_est > (16 << 20):
        vmem_limit = int(min(48 << 20, 2 * vmem_est))  # 48 MiB cap: v7x headroom

    kernel = functools.partial(_mlp_fused_kernel, n_layers=n_layers,
                               mxu_dtype=mxu_dtype)

    def run(single_buffer_weights):
        # Weights/biases are grid-invariant; request buffer_count=1 so they
        # are not double-buffered (halves their VMEM residency on v7x).
        w_kwargs = ({"pipeline_mode": pl.Buffered(1)}
                    if single_buffer_weights else {})
        in_specs = [pl.BlockSpec((bm, Din), lambda i: (i, 0))]
        for (w, b) in padded:
            dinl, doutl = w.shape
            in_specs.append(
                pl.BlockSpec((dinl, doutl), lambda i: (0, 0), **w_kwargs))
            in_specs.append(
                pl.BlockSpec((1, doutl), lambda i: (0, 0), **w_kwargs))
        out = pl.pallas_call(
            kernel,
            out_shape=out_shape,
            grid_spec=pltpu.PrefetchScalarGridSpec(
                num_scalar_prefetch=0,
                grid=grid,
                in_specs=in_specs,
                out_specs=out_specs,
            ),
            compiler_params=pltpu.CompilerParams(
                dimension_semantics=("parallel",),
                vmem_limit_bytes=vmem_limit),
            cost_estimate=cost,
            interpret=interpret,
        )(*flat_inputs)
        return jax.block_until_ready(out)

    try:
        out = run(single_buffer_weights=True)
    except Exception:
        # Fallback: default (double-buffered) pipelining if this jax version
        # rejects pl.Buffered(1) on top-level BlockSpecs.
        out = run(single_buffer_weights=False)

    # Slice away batch + lane padding outside the kernel.
    return out[:B, :no_labels]


def init_mlp_params(key, no_features, hidden_layer_widths, no_labels):
    """PyTorch nn.Linear default init: U(-1/sqrt(fan_in), 1/sqrt(fan_in)).

    Weights stored transposed relative to PyTorch, i.e. (in, out), so the
    kernel computes y = x @ W + b directly on the MXU."""
    dims = [no_features] + list(hidden_layer_widths) + [no_labels]
    params = []
    for i in range(len(dims) - 1):
        fan_in, fan_out = dims[i], dims[i + 1]
        key, kw, kb = jax.random.split(key, 3)
        bound = 1.0 / (fan_in ** 0.5)
        w = jax.random.uniform(kw, (fan_in, fan_out), jnp.float32, -bound, bound)
        b = jax.random.uniform(kb, (fan_out,), jnp.float32, -bound, bound)
        params.append((w, b))
    return params


def mlp_reference(params, x):
    for (w, b) in params[:-1]:
        x = jnp.maximum(x @ w + b, 0.0)
    w, b = params[-1]
    return jax.nn.sigmoid(x @ w + b)


if __name__ == "__main__":
    no_features = 32
    hidden_layer_widths = [64, 32]
    no_labels = 4
    batch = 8

    key = jax.random.PRNGKey(0)
    key, kx = jax.random.split(key)
    x = jax.random.normal(kx, (batch, no_features), jnp.float32)
    params = init_mlp_params(key, no_features, hidden_layer_widths, no_labels)

    out = mlp_forward(params, x)
    out = jax.block_until_ready(out)

    ref = mlp_reference(params, x)
    assert out.shape == (batch, no_labels)
    assert jnp.allclose(out, ref, atol=1e-5, rtol=1e-5)

    print("KERNEL_OK")
</pallas_src>

<mosaic_0001>
module attributes {stable_mosaic.version = 11 : i64} {
  func.func @_mlp_fused_kernel(%arg0: i32, %arg1: memref<8x32xf32, #tpu.memory_space<vmem>>, %arg2: memref<32x128xf32, #tpu.memory_space<vmem>>, %arg3: memref<1x128xf32, #tpu.memory_space<vmem>>, %arg4: memref<128x128xf32, #tpu.memory_space<vmem>>, %arg5: memref<1x128xf32, #tpu.memory_space<vmem>>, %arg6: memref<128x128xf32, #tpu.memory_space<vmem>>, %arg7: memref<1x128xf32, #tpu.memory_space<vmem>>, %arg8: memref<8x128xf32, #tpu.memory_space<vmem>>) attributes {dimension_semantics = [#tpu.dimension_semantics<parallel>], iteration_bounds = array<i64: 1>, scalar_prefetch = 0 : i64, scratch_operands = 0 : i64, tpu.core_type = #tpu.core_type<tc>, window_params = [{transform_indices = @transform_0, window_bounds = array<i64: 8, 32>}, {pipeline_mode = #tpu.pipeline_mode<synchronous>, transform_indices = @transform_1, window_bounds = array<i64: 32, 128>}, {pipeline_mode = #tpu.pipeline_mode<synchronous>, transform_indices = @transform_2, window_bounds = array<i64: 1, 128>}, {pipeline_mode = #tpu.pipeline_mode<synchronous>, transform_indices = @transform_3, window_bounds = array<i64: 128, 128>}, {pipeline_mode = #tpu.pipeline_mode<synchronous>, transform_indices = @transform_4, window_bounds = array<i64: 1, 128>}, {pipeline_mode = #tpu.pipeline_mode<synchronous>, transform_indices = @transform_5, window_bounds = array<i64: 128, 128>}, {pipeline_mode = #tpu.pipeline_mode<synchronous>, transform_indices = @transform_6, window_bounds = array<i64: 1, 128>}, {transform_indices = @transform_7, window_bounds = array<i64: 8, 128>}]} {
    %c0 = arith.constant 0 : index
    %c0_0 = arith.constant 0 : index
    %0 = vector.load %arg1[%c0, %c0_0] : memref<8x32xf32, #tpu.memory_space<vmem>>, vector<8x32xf32>
    %c0_1 = arith.constant 0 : index
    %c0_2 = arith.constant 0 : index
    %1 = vector.load %arg2[%c0_1, %c0_2] : memref<32x128xf32, #tpu.memory_space<vmem>>, vector<32x128xf32>
    %c0_3 = arith.constant 0 : index
    %c0_4 = arith.constant 0 : index
    %2 = vector.load %arg3[%c0_3, %c0_4] : memref<1x128xf32, #tpu.memory_space<vmem>>, vector<1x128xf32>
    %cst = arith.constant dense<0.000000e+00> : vector<8x128xf32>
    %3 = tpu.matmul %0, %1, %cst {dimension_numbers = #tpu.dot_dimension_numbers<[1], [0], [0], [1], [0, 0, 1, 1], [], []>} : vector<8x32xf32>, vector<32x128xf32>, vector<8x128xf32> -> vector<8x128xf32>
    %4 = vector.broadcast %2 : vector<1x128xf32> to vector<8x128xf32>
    %5 = arith.addf %3, %4 : vector<8x128xf32>
    %cst_5 = arith.constant 0.000000e+00 : f32
    %6 = vector.broadcast %cst_5 : f32 to vector<8x128xf32>
    %7 = arith.maximumf %5, %6 : vector<8x128xf32>
    %c0_6 = arith.constant 0 : index
    %c0_7 = arith.constant 0 : index
    %8 = vector.load %arg4[%c0_6, %c0_7] : memref<128x128xf32, #tpu.memory_space<vmem>>, vector<128x128xf32>
    %c0_8 = arith.constant 0 : index
    %c0_9 = arith.constant 0 : index
    %9 = vector.load %arg5[%c0_8, %c0_9] : memref<1x128xf32, #tpu.memory_space<vmem>>, vector<1x128xf32>
    %cst_10 = arith.constant dense<0.000000e+00> : vector<8x128xf32>
    %10 = tpu.matmul %7, %8, %cst_10 {dimension_numbers = #tpu.dot_dimension_numbers<[1], [0], [0], [1], [0, 0, 1, 1], [], []>} : vector<8x128xf32>, vector<128x128xf32>, vector<8x128xf32> -> vector<8x128xf32>
    %11 = vector.broadcast %9 : vector<1x128xf32> to vector<8x128xf32>
    %12 = arith.addf %10, %11 : vector<8x128xf32>
    %cst_11 = arith.constant 0.000000e+00 : f32
    %13 = vector.broadcast %cst_11 : f32 to vector<8x128xf32>
    %14 = arith.maximumf %12, %13 : vector<8x128xf32>
    %c0_12 = arith.constant 0 : index
    %c0_13 = arith.constant 0 : index
    %15 = vector.load %arg6[%c0_12, %c0_13] : memref<128x128xf32, #tpu.memory_space<vmem>>, vector<128x128xf32>
    %c0_14 = arith.constant 0 : index
    %c0_15 = arith.constant 0 : index
    %16 = vector.load %arg7[%c0_14, %c0_15] : memref<1x128xf32, #tpu.memory_space<vmem>>, vector<1x128xf32>
    %cst_16 = arith.constant dense<0.000000e+00> : vector<8x128xf32>
    %17 = tpu.matmul %14, %15, %cst_16 {dimension_numbers = #tpu.dot_dimension_numbers<[1], [0], [0], [1], [0, 0, 1, 1], [], []>} : vector<8x128xf32>, vector<128x128xf32>, vector<8x128xf32> -> vector<8x128xf32>
    %18 = vector.broadcast %16 : vector<1x128xf32> to vector<8x128xf32>
    %19 = arith.addf %17, %18 : vector<8x128xf32>
    %20 = arith.negf %19 : vector<8x128xf32>
    %21 = math.exp %20 : vector<8x128xf32>
    %cst_17 = arith.constant 1.000000e+00 : f32
    %22 = vector.broadcast %cst_17 : f32 to vector<8x128xf32>
    %23 = arith.addf %22, %21 : vector<8x128xf32>
    %24 = arith.divf %22, %23 : vector<8x128xf32>
    %c0_18 = arith.constant 0 : index
    %c0_19 = arith.constant 0 : index
    %25 = vector.load %arg8[%c0_18, %c0_19] : memref<8x128xf32, #tpu.memory_space<vmem>>, vector<8x128xf32>
    tpu.vector_store %arg8[%c0_18, %c0_19], %24 {strides = array<i32>} : memref<8x128xf32, #tpu.memory_space<vmem>>, vector<8x128xf32>,
    return
  }
  func.func @transform_0(%arg0: i32) -> (i32, i32) {
    %c0_i32 = arith.constant 0 : i32
    %c0_i32_0 = arith.constant 0 : i32
    return %arg0, %c0_i32 : i32, i32
  }
  func.func @transform_1(%arg0: i32) -> (i32, i32) {
    %c0_i32 = arith.constant 0 : i32
    %c0_i32_0 = arith.constant 0 : i32
    %c0_i32_1 = arith.constant 0 : i32
    return %c0_i32, %c0_i32_0 : i32, i32
  }
  func.func @transform_2(%arg0: i32) -> (i32, i32) {
    %c0_i32 = arith.constant 0 : i32
    %c0_i32_0 = arith.constant 0 : i32
    %c0_i32_1 = arith.constant 0 : i32
    return %c0_i32, %c0_i32_0 : i32, i32
  }
  func.func @transform_3(%arg0: i32) -> (i32, i32) {
    %c0_i32 = arith.constant 0 : i32
    %c0_i32_0 = arith.constant 0 : i32
    %c0_i32_1 = arith.constant 0 : i32
    return %c0_i32, %c0_i32_0 : i32, i32
  }
  func.func @transform_4(%arg0: i32) -> (i32, i32) {
    %c0_i32 = arith.constant 0 : i32
    %c0_i32_0 = arith.constant 0 : i32
    %c0_i32_1 = arith.constant 0 : i32
    return %c0_i32, %c0_i32_0 : i32, i32
  }
  func.func @transform_5(%arg0: i32) -> (i32, i32) {
    %c0_i32 = arith.constant 0 : i32
    %c0_i32_0 = arith.constant 0 : i32
    %c0_i32_1 = arith.constant 0 : i32
    return %c0_i32, %c0_i32_0 : i32, i32
  }
  func.func @transform_6(%arg0: i32) -> (i32, i32) {
    %c0_i32 = arith.constant 0 : i32
    %c0_i32_0 = arith.constant 0 : i32
    %c0_i32_1 = arith.constant 0 : i32
    return %c0_i32, %c0_i32_0 : i32, i32
  }
  func.func @transform_7(%arg0: i32) -> (i32, i32) {
    %c0_i32 = arith.constant 0 : i32
    %c0_i32_0 = arith.constant 0 : i32
    return %arg0, %c0_i32 : i32, i32
  }
}

module attributes {stable_mosaic.version = 11 : i64} {
  func.func @_mlp_fused_kernel(%arg0: i32, %arg1: memref<8x32xf32, #tpu.memory_space<vmem>>, %arg2: memref<32x128xf32, #tpu.memory_space<vmem>>, %arg3: memref<1x128xf32, #tpu.memory_space<vmem>>, %arg4: memref<128x128xf32, #tpu.memory_space<vmem>>, %arg5: memref<1x128xf32, #tpu.memory_space<vmem>>, %arg6: memref<128x128xf32, #tpu.memory_space<vmem>>, %arg7: memref<1x128xf32, #tpu.memory_space<vmem>>, %arg8: memref<8x128xf32, #tpu.memory_space<vmem>>) attributes {dimension_semantics = [#tpu.dimension_semantics<parallel>], iteration_bounds = array<i64: 1>, scalar_prefetch = 0 : i64, scratch_operands = 0 : i64, tpu.core_type = #tpu.core_type<tc>, window_params = [{transform_indices = @transform_0, window_bounds = array<i64: 8, 32>}, {pipeline_mode = #tpu.pipeline_mode<synchronous>, transform_indices = @transform_1, window_bounds = array<i64: 32, 128>}, {pipeline_mode = #tpu.pipeline_mode<synchronous>, transform_indices = @transform_2, window_bounds = array<i64: 1, 128>}, {pipeline_mode = #tpu.pipeline_mode<synchronous>, transform_indices = @transform_3, window_bounds = array<i64: 128, 128>}, {pipeline_mode = #tpu.pipeline_mode<synchronous>, transform_indices = @transform_4, window_bounds = array<i64: 1, 128>}, {pipeline_mode = #tpu.pipeline_mode<synchronous>, transform_indices = @transform_5, window_bounds = array<i64: 128, 128>}, {pipeline_mode = #tpu.pipeline_mode<synchronous>, transform_indices = @transform_6, window_bounds = array<i64: 1, 128>}, {transform_indices = @transform_7, window_bounds = array<i64: 8, 128>}]} {
    %c0 = arith.constant 0 : index
    %c0_0 = arith.constant 0 : index
    %0 = vector.load %arg1[%c0, %c0_0] : memref<8x32xf32, #tpu.memory_space<vmem>>, vector<8x32xf32>
    %c0_1 = arith.constant 0 : index
    %c0_2 = arith.constant 0 : index
    %1 = vector.load %arg2[%c0_1, %c0_2] : memref<32x128xf32, #tpu.memory_space<vmem>>, vector<32x128xf32>
    %c0_3 = arith.constant 0 : index
    %c0_4 = arith.constant 0 : index
    %2 = vector.load %arg3[%c0_3, %c0_4] : memref<1x128xf32, #tpu.memory_space<vmem>>, vector<1x128xf32>
    %cst = arith.constant dense<0.000000e+00> : vector<8x128xf32>
    %3 = tpu.matmul %0, %1, %cst {dimension_numbers = #tpu.dot_dimension_numbers<[1], [0], [0], [1], [0, 0, 1, 1], [], []>} : vector<8x32xf32>, vector<32x128xf32>, vector<8x128xf32> -> vector<8x128xf32>
    %4 = vector.broadcast %2 : vector<1x128xf32> to vector<8x128xf32>
    %5 = arith.addf %3, %4 : vector<8x128xf32>
    %cst_5 = arith.constant 0.000000e+00 : f32
    %6 = vector.broadcast %cst_5 : f32 to vector<8x128xf32>
    %7 = arith.maximumf %5, %6 : vector<8x128xf32>
    %c0_6 = arith.constant 0 : index
    %c0_7 = arith.constant 0 : index
    %8 = vector.load %arg4[%c0_6, %c0_7] : memref<128x128xf32, #tpu.memory_space<vmem>>, vector<128x128xf32>
    %c0_8 = arith.constant 0 : index
    %c0_9 = arith.constant 0 : index
    %9 = vector.load %arg5[%c0_8, %c0_9] : memref<1x128xf32, #tpu.memory_space<vmem>>, vector<1x128xf32>
    %cst_10 = arith.constant dense<0.000000e+00> : vector<8x128xf32>
    %10 = tpu.matmul %7, %8, %cst_10 {dimension_numbers = #tpu.dot_dimension_numbers<[1], [0], [0], [1], [0, 0, 1, 1], [], []>} : vector<8x128xf32>, vector<128x128xf32>, vector<8x128xf32> -> vector<8x128xf32>
    %11 = vector.broadcast %9 : vector<1x128xf32> to vector<8x128xf32>
    %12 = arith.addf %10, %11 : vector<8x128xf32>
    %cst_11 = arith.constant 0.000000e+00 : f32
    %13 = vector.broadcast %cst_11 : f32 to vector<8x128xf32>
    %14 = arith.maximumf %12, %13 : vector<8x128xf32>
    %c0_12 = arith.constant 0 : index
    %c0_13 = arith.constant 0 : index
    %15 = vector.load %arg6[%c0_12, %c0_13] : memref<128x128xf32, #tpu.memory_space<vmem>>, vector<128x128xf32>
    %c0_14 = arith.constant 0 : index
    %c0_15 = arith.constant 0 : index
    %16 = vector.load %arg7[%c0_14, %c0_15] : memref<1x128xf32, #tpu.memory_space<vmem>>, vector<1x128xf32>
    %cst_16 = arith.constant dense<0.000000e+00> : vector<8x128xf32>
    %17 = tpu.matmul %14, %15, %cst_16 {dimension_numbers = #tpu.dot_dimension_numbers<[1], [0], [0], [1], [0, 0, 1, 1], [], []>} : vector<8x128xf32>, vector<128x128xf32>, vector<8x128xf32> -> vector<8x128xf32>
    %18 = vector.broadcast %16 : vector<1x128xf32> to vector<8x128xf32>
    %19 = arith.addf %17, %18 : vector<8x128xf32>
    %20 = arith.negf %19 : vector<8x128xf32>
    %21 = math.exp %20 : vector<8x128xf32>
    %cst_17 = arith.constant 1.000000e+00 : f32
    %22 = vector.broadcast %cst_17 : f32 to vector<8x128xf32>
    %23 = arith.addf %22, %21 : vector<8x128xf32>
    %24 = arith.divf %22, %23 : vector<8x128xf32>
    %c0_18 = arith.constant 0 : index
    %c0_19 = arith.constant 0 : index
    %25 = vector.load %arg8[%c0_18, %c0_19] : memref<8x128xf32, #tpu.memory_space<vmem>>, vector<8x128xf32>
    tpu.vector_store %arg8[%c0_18, %c0_19], %24 {strides = array<i32>} : memref<8x128xf32, #tpu.memory_space<vmem>>, vector<8x128xf32>,
    return
  }
  func.func @transform_0(%arg0: i32) -> (i32, i32) {
    %c0_i32 = arith.constant 0 : i32
    %c0_i32_0 = arith.constant 0 : i32
    return %arg0, %c0_i32 : i32, i32
  }
  func.func @transform_1(%arg0: i32) -> (i32, i32) {
    %c0_i32 = arith.constant 0 : i32
    %c0_i32_0 = arith.constant 0 : i32
    %c0_i32_1 = arith.constant 0 : i32
    return %c0_i32, %c0_i32_0 : i32, i32
  }
  func.func @transform_2(%arg0: i32) -> (i32, i32) {
    %c0_i32 = arith.constant 0 : i32
    %c0_i32_0 = arith.constant 0 : i32
    %c0_i32_1 = arith.constant 0 : i32
    return %c0_i32, %c0_i32_0 : i32, i32
  }
  func.func @transform_3(%arg0: i32) -> (i32, i32) {
    %c0_i32 = arith.constant 0 : i32
    %c0_i32_0 = arith.constant 0 : i32
    %c0_i32_1 = arith.constant 0 : i32
    return %c0_i32, %c0_i32_0 : i32, i32
  }
  func.func @transform_4(%arg0: i32) -> (i32, i32) {
    %c0_i32 = arith.constant 0 : i32
    %c0_i32_0 = arith.constant 0 : i32
    %c0_i32_1 = arith.constant 0 : i32
    return %c0_i32, %c0_i32_0 : i32, i32
  }
  func.func @transform_5(%arg0: i32) -> (i32, i32) {
    %c0_i32 = arith.constant 0 : i32
    %c0_i32_0 = arith.constant 0 : i32
    %c0_i32_1 = arith.constant 0 : i32
    return %c0_i32, %c0_i32_0 : i32, i32
  }
  func.func @transform_6(%arg0: i32) -> (i32, i32) {
    %c0_i32 = arith.constant 0 : i32
    %c0_i32_0 = arith.constant 0 : i32
    %c0_i32_1 = arith.constant 0 : i32
    return %c0_i32, %c0_i32_0 : i32, i32
  }
  func.func @transform_7(%arg0: i32) -> (i32, i32) {
    %c0_i32 = arith.constant 0 : i32
    %c0_i32_0 = arith.constant 0 : i32
    return %arg0, %c0_i32 : i32, i32
  }
}

</mosaic_0001>

<bundles_post_ra>
// kernel: tpu_custom_call.1
= control target key start
LH: loop header
LB: loop body
LE: loop exit
PB: predicated region body
PF: predicated region fallthrough
CT: control target
= control target key end

     0   :  { %12 = vsyncpa [#allocation3], 0  ;;  %s457_s0 = inlined_call_operand.hbm [shape: f32[8,32], index: 0, kind: input, shape index: {}]   ;;  %s458_s1 = inlined_call_operand.hbm [shape: f32[32,128], index: 1, kind: input, shape index: {}]   ;;  %s459_s2 = inlined_call_operand.vmem [shape: f32[1,128], index: 2, kind: input, shape index: {}]   ;;  %s460_s3 = inlined_call_operand.hbm [shape: f32[128,128], index: 3, kind: input, shape index: {}]   ;;  %s461_s4 = inlined_call_operand.vmem [shape: f32[1,128], index: 4, kind: input, shape index: {}]   ;;  %s462_s5 = inlined_call_operand.hbm [shape: f32[128,128], index: 5, kind: input, shape index: {}]   ;;  %s463_s6 = inlined_call_operand.vmem [shape: f32[1,128], index: 6, kind: input, shape index: {}]   ;;  %s464_s7 = inlined_call_operand.hbm [shape: f32[8,128], index: 7, kind: output, shape index: {}]  }
   0x1   :  { %13 = vsyncpa [#allocation6], 0 }
   0x2   :  { %14 = vsyncpa [#allocation9], 0  ;;  %s31_s26 = sshll.u32 %s458_s1, 4  ;;  %s32_s26 = int_to_ptr.hbm [resolvable:$true] %s31_s26 }
   0x3   :  { %15 = vsyncpa [#allocation4], 0  ;;  %s386_s27 = smov [#allocation5]   ;;  %s21_s8 = sshll.u32 %s457_s0, 4  ;;  %s22_s8 = int_to_ptr.hbm [resolvable:$true] %s21_s8 }
   0x4   :  { %s33_s28 = sshll.u32 %s386_s27, 4  ;;  %s387_s9 = smov 128   ;;  %s34_s28 = int_to_ptr.vmem [resolvable:$true] %s33_s28 }
   0x5   :  { %s388_s10 = smov 8   ;;  %s389_s11 = smov [#allocation2]  }
   0x6   :  { %39 = dma.hbm_to_vmem [thread:$0]  %s32_s26, 512, %s34_s28, [#allocation6], %s387_s9, %s387_s9, %s388_s10  }
   0x7   :  { %s23_s12 = sshll.u32 %s389_s11, 4  ;;  %s46_s15 = sshll.u32 %s460_s3, 4  ;;  %s24_s12 = int_to_ptr.vmem [resolvable:$true] %s23_s12  ;;  %s47_s15 = int_to_ptr.hbm [resolvable:$true] %s46_s15 }
   0x8   :  { %26 = dma.hbm_to_vmem [thread:$0]  %s22_s8, 128, %s24_s12, [#allocation3]  }
   0x9   :  { %s61_s17 = sshll.u32 %s462_s5, 4  ;;  %s390_s18 = smov [#allocation7]   ;;  %s62_s17 = int_to_ptr.hbm [resolvable:$true] %s61_s17 }
   0xa   :  { %s48_s19 = sshll.u32 %s390_s18, 4  ;;  %s391_s0 = smov [#allocation8]   ;;  %s49_s19 = int_to_ptr.vmem [resolvable:$true] %s48_s19 }
   0xb   :  { %54 = dma.hbm_to_vmem [thread:$0]  %s47_s15, 2048, %s49_s19, [#allocation6], %s387_s9, %s387_s9, %s388_s10  }
   0xc   :  { %s63_s20 = sshll.u32 %s391_s0, 4  ;;  %s64_s20 = int_to_ptr.vmem [resolvable:$true] %s63_s20 }
   0xd   :  { %69 = dma.hbm_to_vmem [thread:$0]  %s62_s17, 2048, %s64_s20, [#allocation9], %s387_s9, %s387_s9, %s388_s10  }
   0xe   :  { %378 = dma.done.wait [#allocation3], 128  }
   0xf   :  { %379 = vsyncadd [#allocation3], 4294967168 }
  0x10   :  { %380 = dma.done.wait [#allocation6], 2560  }
  0x11   :  { %381 = vsyncadd [#allocation6], 4294964736 }
  0x12   :  { %382 = dma.done.wait [#allocation9], 2048  }
  0x13   :  { %383 = vsyncadd [#allocation9], 4294965248  ;;  %v92_v0 = vld [vmem:[#allocation5 + $0x18] sm:$0xff]  ;;  %v91_v1 = vld [vmem:[#allocation5 + $0x10] sm:$0xff]  ;;  %vm97_vm0 = vcmask 261120  }
  0x14   :  { %113 = vmatpush.msra.mxu0 %v92_v0  ;;  %v137_v2 = vld [vmem:[#allocation7 + $0x78] sm:$0xff]  ;;  %v90_v3 = vld [vmem:[#allocation5 + $0x8] sm:$0xff]  ;;  %v136_v4 = vld [vmem:[#allocation7 + $0x70] sm:$0xff] }
  0x15   :  { %142 = vmatpush.msra.mxu1 %v137_v2  ;;  %v135_v5 = vld [vmem:[#allocation7 + $0x68] sm:$0xff]  ;;  %v89_v6 = vld [vmem:[#allocation5] sm:$0xff]  ;;  %v88_v7 = vld [vmem:[#allocation2] sm:$0xff] }
  0x16   :  { %114 = vmatpush.msra.mxu0 %v91_v1  ;;  %v134_v8 = vld [vmem:[#allocation7 + $0x60] sm:$0xff]  ;;  %v133_v9 = vld [vmem:[#allocation7 + $0x58] sm:$0xff]  ;;  %v132_v10 = vld [vmem:[#allocation7 + $0x50] sm:$0xff] }
  0x17   :  { %143 = vmatpush.msra.mxu1 %v136_v4  ;;  %v131_v11 = vld [vmem:[#allocation7 + $0x48] sm:$0xff]  ;;  %v130_v12 = vld [vmem:[#allocation7 + $0x40] sm:$0xff]  ;;  %v129_v13 = vld [vmem:[#allocation7 + $0x38] sm:$0xff] }
  0x18   :  { %115 = vmatpush.msra.mxu0 %v90_v3  ;;  %v128_v14 = vld [vmem:[#allocation7 + $0x30] sm:$0xff]  ;;  %v127_v15 = vld [vmem:[#allocation7 + $0x28] sm:$0xff]  ;;  %v126_v16 = vld [vmem:[#allocation7 + $0x20] sm:$0xff] }
  0x19   :  { %144 = vmatpush.msra.mxu1 %v135_v5  ;;  %v125_v17 = vld [vmem:[#allocation7 + $0x18] sm:$0xff]  ;;  %v124_v18 = vld [vmem:[#allocation7 + $0x10] sm:$0xff]  ;;  %v123_v19 = vld [vmem:[#allocation7 + $0x8] sm:$0xff] }
  0x1a   :  { %116 = vmatpush.msra.mxu0 %v89_v6  ;;  %v122_v20 = vld [vmem:[#allocation7] sm:$0xff]  ;;  %v178_v21 = vld [vmem:[#allocation8 + $0x78] sm:$0xff]  ;;  %v177_v22 = vld [vmem:[#allocation8 + $0x70] sm:$0xff] }
  0x1b   :  { %242 = vmatmul.msk.f32.vlgmr.msra.gmra.mxu0 %vm97_vm0, %v88_v7  ;;  %145 = vmatpush.msra.mxu1 %v134_v8  ;;  %v176_v23 = vld [vmem:[#allocation8 + $0x68] sm:$0xff]  ;;  %v175_v24 = vld [vmem:[#allocation8 + $0x60] sm:$0xff]  ;;  %v174_v25 = vld [vmem:[#allocation8 + $0x58] sm:$0xff] }
  0x1c   :  { %183 = vmatpush.msra.mxu2 %v178_v21  ;;  %v173_v26 = vld [vmem:[#allocation8 + $0x50] sm:$0xff]  ;;  %v172_v27 = vld [vmem:[#allocation8 + $0x48] sm:$0xff]  ;;  %v171_v28 = vld [vmem:[#allocation8 + $0x40] sm:$0xff] }
  0x1d   :  { %146 = vmatpush.msra.mxu1 %v133_v9  ;;  %v170_v29 = vld [vmem:[#allocation8 + $0x38] sm:$0xff]  ;;  %v169_v30 = vld [vmem:[#allocation8 + $0x30] sm:$0xff]  ;;  %v168_v31 = vld [vmem:[#allocation8 + $0x28] sm:$0xff] }
  0x1e   :  { %184 = vmatpush.msra.mxu2 %v177_v22  ;;  %v167_v32 = vld [vmem:[#allocation8 + $0x20] sm:$0xff]  ;;  %v166_v33 = vld [vmem:[#allocation8 + $0x18] sm:$0xff]  ;;  %v165_v38 = vld [vmem:[#allocation8 + $0x10] sm:$0xff] }
  0x1f   :  { %147 = vmatpush.msra.mxu1 %v132_v10  ;;  %v251_v34 = vld [vmem:[%s459_s2] ss:$0 sm:$0xff]  ;;  %v164_v39 = vld [vmem:[#allocation8 + $0x8] sm:$0xff]  ;;  %v163_v40 = vld [vmem:[#allocation8] sm:$0xff] }
  0x20   :  { %185 = vmatpush.msra.mxu2 %v176_v23  ;;  %v252_v41 = vld [vmem:[%s461_s4] ss:$0 sm:$0xff]  ;;  %s392_s4 = smov [#allocation10]  }
  0x21   :  { %148 = vmatpush.msra.mxu1 %v131_v11  ;;  %v253_v45 = vld [vmem:[%s463_s6] ss:$0 sm:$0xff]  ;;  %s228_s24 = sshll.u32 %s392_s4, 4  ;;  %s230_s6 = sshll.u32 %s464_s7, 4  ;;  %s229_s24 = int_to_ptr.vmem [resolvable:$true] %s228_s24  ;;  %s231_s6 = int_to_ptr.hbm [resolvable:$true] %s230_s6 }
  0x22   :  { %186 = vmatpush.msra.mxu2 %v175_v24 }
  0x23   :  { %149 = vmatpush.msra.mxu1 %v130_v12 }
  0x24   :  { %187 = vmatpush.msra.mxu2 %v174_v25 }
  0x25   :  { %150 = vmatpush.msra.mxu1 %v129_v13 }
  0x26   :  { %188 = vmatpush.msra.mxu2 %v173_v26 }
  0x27   :  { %151 = vmatpush.msra.mxu1 %v128_v14 }
  0x28   :  { %189 = vmatpush.msra.mxu2 %v172_v27 }
  0x29   :  { %152 = vmatpush.msra.mxu1 %v127_v15 }
  0x2a   :  { %190 = vmatpush.msra.mxu2 %v171_v28 }
  0x2b   :  { %153 = vmatpush.msra.mxu1 %v126_v16 }
  0x2c   :  { %191 = vmatpush.msra.mxu2 %v170_v29 }
  0x2d   :  { %154 = vmatpush.msra.mxu1 %v125_v17 }
  0x2e   :  { %192 = vmatpush.msra.mxu2 %v169_v30 }
  0x2f   :  { %155 = vmatpush.msra.mxu1 %v124_v18 }
  0x30   :  { %193 = vmatpush.msra.mxu2 %v168_v31 }
  0x31   :  { %156 = vmatpush.msra.mxu1 %v123_v19 }
  0x32   :  { %194 = vmatpush.msra.mxu2 %v167_v32 }
  0x33   :  { %157 = vmatpush.msra.mxu1 %v122_v20 }
  0x34   :  { %195 = vmatpush.msra.mxu2 %v166_v33 }
  0x36   :  { %196 = vmatpush.msra.mxu2 %v165_v38 }
  0x38   :  { %197 = vmatpush.msra.mxu2 %v164_v39 }
  0x3a   :  { %198 = vmatpush.msra.mxu2 %v163_v40 }
  0x98   :  { %v118_v35 = vpop.f32.mrf.mxu0 }
  0x99   :  { %v119_v36 = vadd.f32 %v251_v34, %v118_v35 }
  0x9b   :  { %v121_v37 = vmax.f32 %v119_v36, 0.0 }
  0x9d   :  { %158 = vmatmul.f32.vlgmr.msra.gmra.mxu1 %v121_v37 }
 0x11a   :  { %v159_v42 = vpop.f32.mrf.mxu1 }
 0x11b   :  { %v160_v43 = vadd.f32 %v252_v41, %v159_v42 }
 0x11d   :  { %v162_v44 = vmax.f32 %v160_v43, 0.0 }
 0x11f   :  { %199 = vmatmul.f32.vlgmr.msra.gmra.mxu2 %v162_v44 }
 0x1a2   :  { %v200_v46 = vpop.f32.mrf.mxu2 }
 0x1a3   :  { %v201_v47 = vadd.f32 %v253_v45, %v200_v46 }
 0x1a5   :  { %v243_v48 = vmul.f32 -1.442695, %v201_v47 }
 0x1a7   :  { %254 = vpow2.f32 %v243_v48 }
 0x1ad   :  { %v255_v49 = vpop.eup %254 }
 0x1ae   :  { %v206_v50 = vadd.f32 1.0, %v255_v49 }
 0x1b0   :  { %256 = vrcp.f32 %v206_v50  ;;  %v218_v54 = vand.u32 2147483648, %v206_v50  ;;  %v216_v56 = vand.u32 2147483647, %v206_v50  ;;  %vm212_vm2 = vweird.f32 %v206_v50 }
 0x1b2   :  { %v219_v58 = vor.u32 1.1754944e-38, %v218_v54  ;;  %vm217_vm4 = vcmp.eq.f32.partialorder %v216_v56, 8.507059e+37 }
 0x1b6   :  { %v257_v51 = vpop.eup %256 }
 0x1b7   :  { %v208_v52 = vmul.f32 %v257_v51, %v206_v50  ;;  %vm213_vm1 = vweird.f32 %v257_v51 }
 0x1b8   :  { %vm214_vm3 = vmor %vm212_vm2, %vm213_vm1 }
 0x1b9   :  { %v209_v53 = vsub.f32 1.0, %v208_v52 }
 0x1bb   :  { %v210_v55 = vmul.f32 %v257_v51, %v209_v53 }
 0x1bd   :  { %v211_v57 = vadd.f32 %v257_v51, %v210_v55 }
 0x1bf   :  { %v215_v59 = vsel %vm214_vm3, %v257_v51, %v211_v57 }
 0x1c0   :  { %v220_v60 = vsel %vm217_vm4, %v219_v58, %v215_v59 }
 0x1c1   :  { %222 = vst [vmem:[#allocation10] sm:$0xff] %v220_v60 }
 0x1c2   :  { %233 = dma.vmem_to_hbm [thread:$0]  %s229_s24, 128, %s231_s6, [#allocation4]  }
 0x1c3   :  { %384 = dma.done.wait [#allocation4], 128  }
 0x1c4   :  { %385 = vsyncadd [#allocation4], 4294967168 }
 0x1c5   :  { %238 = vsyncpa [#allocation3], 1 }
 0x1c6   :  { %239 = vsyncpa [#allocation6], 1 }
 0x1c7   :  { %240 = vsyncpa [#allocation9], 1 }
 0x1c8   :  { %241 = vsyncpa [#allocation4], 1 }

// kernel: tpu_custom_call.1
= control target key start
LH: loop header
LB: loop body
LE: loop exit
PB: predicated region body
PF: predicated region fallthrough
CT: control target
= control target key end

     0   :  { %12 = vsyncpa [#allocation3], 0  ;;  %s457_s0 = inlined_call_operand.hbm [shape: f32[8,32], index: 0, kind: input, shape index: {}]   ;;  %s458_s1 = inlined_call_operand.hbm [shape: f32[32,128], index: 1, kind: input, shape index: {}]   ;;  %s459_s2 = inlined_call_operand.vmem [shape: f32[1,128], index: 2, kind: input, shape index: {}]   ;;  %s460_s3 = inlined_call_operand.hbm [shape: f32[128,128], index: 3, kind: input, shape index: {}]   ;;  %s461_s4 = inlined_call_operand.vmem [shape: f32[1,128], index: 4, kind: input, shape index: {}]   ;;  %s462_s5 = inlined_call_operand.hbm [shape: f32[128,128], index: 5, kind: input, shape index: {}]   ;;  %s463_s6 = inlined_call_operand.vmem [shape: f32[1,128], index: 6, kind: input, shape index: {}]   ;;  %s464_s7 = inlined_call_operand.hbm [shape: f32[8,128], index: 7, kind: output, shape index: {}]  }
   0x1   :  { %13 = vsyncpa [#allocation6], 0 }
   0x2   :  { %14 = vsyncpa [#allocation9], 0  ;;  %s31_s26 = sshll.u32 %s458_s1, 4  ;;  %s32_s26 = int_to_ptr.hbm [resolvable:$true] %s31_s26 }
   0x3   :  { %15 = vsyncpa [#allocation4], 0  ;;  %s386_s27 = smov [#allocation5]   ;;  %s21_s8 = sshll.u32 %s457_s0, 4  ;;  %s22_s8 = int_to_ptr.hbm [resolvable:$true] %s21_s8 }
   0x4   :  { %s33_s28 = sshll.u32 %s386_s27, 4  ;;  %s387_s9 = smov 128   ;;  %s34_s28 = int_to_ptr.vmem [resolvable:$true] %s33_s28 }
   0x5   :  { %s388_s10 = smov 8   ;;  %s389_s11 = smov [#allocation2]  }
   0x6   :  { %39 = dma.hbm_to_vmem [thread:$0]  %s32_s26, 512, %s34_s28, [#allocation6], %s387_s9, %s387_s9, %s388_s10  }
   0x7   :  { %s23_s12 = sshll.u32 %s389_s11, 4  ;;  %s46_s15 = sshll.u32 %s460_s3, 4  ;;  %s24_s12 = int_to_ptr.vmem [resolvable:$true] %s23_s12  ;;  %s47_s15 = int_to_ptr.hbm [resolvable:$true] %s46_s15 }
   0x8   :  { %26 = dma.hbm_to_vmem [thread:$0]  %s22_s8, 128, %s24_s12, [#allocation3]  }
   0x9   :  { %s61_s17 = sshll.u32 %s462_s5, 4  ;;  %s390_s18 = smov [#allocation7]   ;;  %s62_s17 = int_to_ptr.hbm [resolvable:$true] %s61_s17 }
   0xa   :  { %s48_s19 = sshll.u32 %s390_s18, 4  ;;  %s391_s0 = smov [#allocation8]   ;;  %s49_s19 = int_to_ptr.vmem [resolvable:$true] %s48_s19 }
   0xb   :  { %54 = dma.hbm_to_vmem [thread:$0]  %s47_s15, 2048, %s49_s19, [#allocation6], %s387_s9, %s387_s9, %s388_s10  }
   0xc   :  { %s63_s20 = sshll.u32 %s391_s0, 4  ;;  %s64_s20 = int_to_ptr.vmem [resolvable:$true] %s63_s20 }
   0xd   :  { %69 = dma.hbm_to_vmem [thread:$0]  %s62_s17, 2048, %s64_s20, [#allocation9], %s387_s9, %s387_s9, %s388_s10  }
   0xe   :  { %378 = dma.done.wait [#allocation3], 128  }
   0xf   :  { %379 = vsyncadd [#allocation3], 4294967168 }
  0x10   :  { %380 = dma.done.wait [#allocation6], 2560  }
  0x11   :  { %381 = vsyncadd [#allocation6], 4294964736 }
  0x12   :  { %382 = dma.done.wait [#allocation9], 2048  }
  0x13   :  { %383 = vsyncadd [#allocation9], 4294965248  ;;  %v92_v0 = vld [vmem:[#allocation5 + $0x18] sm:$0xff]  ;;  %v91_v1 = vld [vmem:[#allocation5 + $0x10] sm:$0xff]  ;;  %vm97_vm0 = vcmask 261120  }
  0x14   :  { %113 = vmatpush.msra.mxu0 %v92_v0  ;;  %v137_v2 = vld [vmem:[#allocation7 + $0x78] sm:$0xff]  ;;  %v90_v3 = vld [vmem:[#allocation5 + $0x8] sm:$0xff]  ;;  %v136_v4 = vld [vmem:[#allocation7 + $0x70] sm:$0xff] }
  0x15   :  { %142 = vmatpush.msra.mxu1 %v137_v2  ;;  %v135_v5 = vld [vmem:[#allocation7 + $0x68] sm:$0xff]  ;;  %v89_v6 = vld [vmem:[#allocation5] sm:$0xff]  ;;  %v88_v7 = vld [vmem:[#allocation2] sm:$0xff] }
  0x16   :  { %114 = vmatpush.msra.mxu0 %v91_v1  ;;  %v134_v8 = vld [vmem:[#allocation7 + $0x60] sm:$0xff]  ;;  %v133_v9 = vld [vmem:[#allocation7 + $0x58] sm:$0xff]  ;;  %v132_v10 = vld [vmem:[#allocation7 + $0x50] sm:$0xff] }
  0x17   :  { %143 = vmatpush.msra.mxu1 %v136_v4  ;;  %v131_v11 = vld [vmem:[#allocation7 + $0x48] sm:$0xff]  ;;  %v130_v12 = vld [vmem:[#allocation7 + $0x40] sm:$0xff]  ;;  %v129_v13 = vld [vmem:[#allocation7 + $0x38] sm:$0xff] }
  0x18   :  { %115 = vmatpush.msra.mxu0 %v90_v3  ;;  %v128_v14 = vld [vmem:[#allocation7 + $0x30] sm:$0xff]  ;;  %v127_v15 = vld [vmem:[#allocation7 + $0x28] sm:$0xff]  ;;  %v126_v16 = vld [vmem:[#allocation7 + $0x20] sm:$0xff] }
  0x19   :  { %144 = vmatpush.msra.mxu1 %v135_v5  ;;  %v125_v17 = vld [vmem:[#allocation7 + $0x18] sm:$0xff]  ;;  %v124_v18 = vld [vmem:[#allocation7 + $0x10] sm:$0xff]  ;;  %v123_v19 = vld [vmem:[#allocation7 + $0x8] sm:$0xff] }
  0x1a   :  { %116 = vmatpush.msra.mxu0 %v89_v6  ;;  %v122_v20 = vld [vmem:[#allocation7] sm:$0xff]  ;;  %v178_v21 = vld [vmem:[#allocation8 + $0x78] sm:$0xff]  ;;  %v177_v22 = vld [vmem:[#allocation8 + $0x70] sm:$0xff] }
  0x1b   :  { %242 = vmatmul.msk.f32.vlgmr.msra.gmra.mxu0 %vm97_vm0, %v88_v7  ;;  %145 = vmatpush.msra.mxu1 %v134_v8  ;;  %v176_v23 = vld [vmem:[#allocation8 + $0x68] sm:$0xff]  ;;  %v175_v24 = vld [vmem:[#allocation8 + $0x60] sm:$0xff]  ;;  %v174_v25 = vld [vmem:[#allocation8 + $0x58] sm:$0xff] }
  0x1c   :  { %183 = vmatpush.msra.mxu2 %v178_v21  ;;  %v173_v26 = vld [vmem:[#allocation8 + $0x50] sm:$0xff]  ;;  %v172_v27 = vld [vmem:[#allocation8 + $0x48] sm:$0xff]  ;;  %v171_v28 = vld [vmem:[#allocation8 + $0x40] sm:$0xff] }
  0x1d   :  { %146 = vmatpush.msra.mxu1 %v133_v9  ;;  %v170_v29 = vld [vmem:[#allocation8 + $0x38] sm:$0xff]  ;;  %v169_v30 = vld [vmem:[#allocation8 + $0x30] sm:$0xff]  ;;  %v168_v31 = vld [vmem:[#allocation8 + $0x28] sm:$0xff] }
  0x1e   :  { %184 = vmatpush.msra.mxu2 %v177_v22  ;;  %v167_v32 = vld [vmem:[#allocation8 + $0x20] sm:$0xff]  ;;  %v166_v33 = vld [vmem:[#allocation8 + $0x18] sm:$0xff]  ;;  %v165_v38 = vld [vmem:[#allocation8 + $0x10] sm:$0xff] }
  0x1f   :  { %147 = vmatpush.msra.mxu1 %v132_v10  ;;  %v251_v34 = vld [vmem:[%s459_s2] ss:$0 sm:$0xff]  ;;  %v164_v39 = vld [vmem:[#allocation8 + $0x8] sm:$0xff]  ;;  %v163_v40 = vld [vmem:[#allocation8] sm:$0xff] }
  0x20   :  { %185 = vmatpush.msra.mxu2 %v176_v23  ;;  %v252_v41 = vld [vmem:[%s461_s4] ss:$0 sm:$0xff]  ;;  %s392_s4 = smov [#allocation10]  }
  0x21   :  { %148 = vmatpush.msra.mxu1 %v131_v11  ;;  %v253_v45 = vld [vmem:[%s463_s6] ss:$0 sm:$0xff]  ;;  %s228_s24 = sshll.u32 %s392_s4, 4  ;;  %s230_s6 = sshll.u32 %s464_s7, 4  ;;  %s229_s24 = int_to_ptr.vmem [resolvable:$true] %s228_s24  ;;  %s231_s6 = int_to_ptr.hbm [resolvable:$true] %s230_s6 }
  0x22   :  { %186 = vmatpush.msra.mxu2 %v175_v24 }
  0x23   :  { %149 = vmatpush.msra.mxu1 %v130_v12 }
  0x24   :  { %187 = vmatpush.msra.mxu2 %v174_v25 }
  0x25   :  { %150 = vmatpush.msra.mxu1 %v129_v13 }
  0x26   :  { %188 = vmatpush.msra.mxu2 %v173_v26 }
  0x27   :  { %151 = vmatpush.msra.mxu1 %v128_v14 }
  0x28   :  { %189 = vmatpush.msra.mxu2 %v172_v27 }
  0x29   :  { %152 = vmatpush.msra.mxu1 %v127_v15 }
  0x2a   :  { %190 = vmatpush.msra.mxu2 %v171_v28 }
  0x2b   :  { %153 = vmatpush.msra.mxu1 %v126_v16 }
  0x2c   :  { %191 = vmatpush.msra.mxu2 %v170_v29 }
  0x2d   :  { %154 = vmatpush.msra.mxu1 %v125_v17 }
  0x2e   :  { %192 = vmatpush.msra.mxu2 %v169_v30 }
  0x2f   :  { %155 = vmatpush.msra.mxu1 %v124_v18 }
  0x30   :  { %193 = vmatpush.msra.mxu2 %v168_v31 }
  0x31   :  { %156 = vmatpush.msra.mxu1 %v123_v19 }
  0x32   :  { %194 = vmatpush.msra.mxu2 %v167_v32 }
  0x33   :  { %157 = vmatpush.msra.mxu1 %v122_v20 }
  0x34   :  { %195 = vmatpush.msra.mxu2 %v166_v33 }
  0x36   :  { %196 = vmatpush.msra.mxu2 %v165_v38 }
  0x38   :  { %197 = vmatpush.msra.mxu2 %v164_v39 }
  0x3a   :  { %198 = vmatpush.msra.mxu2 %v163_v40 }
  0x98   :  { %v118_v35 = vpop.f32.mrf.mxu0 }
  0x99   :  { %v119_v36 = vadd.f32 %v251_v34, %v118_v35 }
  0x9b   :  { %v121_v37 = vmax.f32 %v119_v36, 0.0 }
  0x9d   :  { %158 = vmatmul.f32.vlgmr.msra.gmra.mxu1 %v121_v37 }
 0x11a   :  { %v159_v42 = vpop.f32.mrf.mxu1 }
 0x11b   :  { %v160_v43 = vadd.f32 %v252_v41, %v159_v42 }
 0x11d   :  { %v162_v44 = vmax.f32 %v160_v43, 0.0 }
 0x11f   :  { %199 = vmatmul.f32.vlgmr.msra.gmra.mxu2 %v162_v44 }
 0x1a2   :  { %v200_v46 = vpop.f32.mrf.mxu2 }
 0x1a3   :  { %v201_v47 = vadd.f32 %v253_v45, %v200_v46 }
 0x1a5   :  { %v243_v48 = vmul.f32 -1.442695, %v201_v47 }
 0x1a7   :  { %254 = vpow2.f32 %v243_v48 }
 0x1ad   :  { %v255_v49 = vpop.eup %254 }
 0x1ae   :  { %v206_v50 = vadd.f32 1.0, %v255_v49 }
 0x1b0   :  { %256 = vrcp.f32 %v206_v50  ;;  %v218_v54 = vand.u32 2147483648, %v206_v50  ;;  %v216_v56 = vand.u32 2147483647, %v206_v50  ;;  %vm212_vm2 = vweird.f32 %v206_v50 }
 0x1b2   :  { %v219_v58 = vor.u32 1.1754944e-38, %v218_v54  ;;  %vm217_vm4 = vcmp.eq.f32.partialorder %v216_v56, 8.507059e+37 }
 0x1b6   :  { %v257_v51 = vpop.eup %256 }
 0x1b7   :  { %v208_v52 = vmul.f32 %v257_v51, %v206_v50  ;;  %vm213_vm1 = vweird.f32 %v257_v51 }
 0x1b8   :  { %vm214_vm3 = vmor %vm212_vm2, %vm213_vm1 }
 0x1b9   :  { %v209_v53 = vsub.f32 1.0, %v208_v52 }
 0x1bb   :  { %v210_v55 = vmul.f32 %v257_v51, %v209_v53 }
 0x1bd   :  { %v211_v57 = vadd.f32 %v257_v51, %v210_v55 }
 0x1bf   :  { %v215_v59 = vsel %vm214_vm3, %v257_v51, %v211_v57 }
 0x1c0   :  { %v220_v60 = vsel %vm217_vm4, %v219_v58, %v215_v59 }
 0x1c1   :  { %222 = vst [vmem:[#allocation10] sm:$0xff] %v220_v60 }
 0x1c2   :  { %233 = dma.vmem_to_hbm [thread:$0]  %s229_s24, 128, %s231_s6, [#allocation4]  }
 0x1c3   :  { %384 = dma.done.wait [#allocation4], 128  }
 0x1c4   :  { %385 = vsyncadd [#allocation4], 4294967168 }
 0x1c5   :  { %238 = vsyncpa [#allocation3], 1 }
 0x1c6   :  { %239 = vsyncpa [#allocation6], 1 }
 0x1c7   :  { %240 = vsyncpa [#allocation9], 1 }
 0x1c8   :  { %241 = vsyncpa [#allocation4], 1 }

</bundles_post_ra>
